<compile_context>
chip_gen: v7x
topology: tpu7x:2x2x1
jax: 0.10.0
libtpu: 0.0.40
codegen_flags: <defaults>
</compile_context>

<pallas_src>
import jax
import jax.numpy as jnp
from jax.experimental import pallas as pl
from jax.experimental.pallas import tpu as pltpu


def _lsq_math_f32(x, step_f32, wlow, whigh):
    """Pure-JAX forward math in f32 (fast path, unaligned tail, and reference)."""
    rt = x.astype(jnp.float32) / step_f32
    x_clip = jnp.clip(rt, wlow, whigh)
    return jnp.round(x_clip) * step_f32


def _make_lsq_kernel(wlow: float, whigh: float):
    def lsq_kernel(step_ref, x_ref, o_ref):
        # step_ref is a float32 scalar in SMEM (scalar prefetch); x/o are VMEM tiles.
        s = step_ref[0]
        x = x_ref[...].astype(jnp.float32)           # f32 math regardless of input dtype
        x_clip = jnp.clip(x / s, wlow, whigh)
        x_round = jnp.round(x_clip)                  # round-half-to-even == torch.round
        o_ref[...] = (x_round * s).astype(o_ref.dtype)
    return lsq_kernel


def _choose_layout(n: int, itemsize: int):
    """Lane-dense 2D layout + ~4 MiB blocks, with >= 4 grid steps when possible."""
    cols = 128
    for c in (4096, 2048, 1024, 512, 256, 128):      # widest lane dim dividing n
        if n % c == 0:
            cols = c
            break
    rows = n // cols

    # Sublane granularity: 8 rows for 32-bit, 16 for 16-bit, 32 for 8-bit dtypes.
    sub = max(8, 32 // itemsize)

    # ~4 MiB tiles: in+out, double-buffered -> <= ~16 MiB VMEM.
    target_bytes = 4 * 1024 * 1024
    block_rows = max(sub, (target_bytes // (cols * itemsize)) // sub * sub)

    # Guarantee several grid steps so both v7x TensorCores get work and DMA
    # overlaps compute; on v5e/v6e (single TC) this is harmless.
    MIN_STEPS = 4
    if -(-rows // block_rows) < MIN_STEPS:
        block_rows = max(sub, (-(-rows // MIN_STEPS) + sub - 1) // sub * sub)
    if block_rows >= rows:
        block_rows = rows                            # full-extent block (always legal)
    return cols, rows, block_rows


def _lsq_pallas_2d(flat, step_f32, wlow, whigh, dtype, itemsize):
    """Run the kernel on a flat array whose length is a multiple of 128."""
    n = flat.shape[0]
    cols, rows, block_rows = _choose_layout(n, itemsize)
    x2 = flat.reshape(rows, cols)

    grid = (pl.cdiv(rows, block_rows),)
    step = jnp.reshape(step_f32, (1,))
    kernel = _make_lsq_kernel(wlow, whigh)

    out2 = pl.pallas_call(
        kernel,
        out_shape=jax.ShapeDtypeStruct((rows, cols), dtype),
        grid_spec=pltpu.PrefetchScalarGridSpec(
            num_scalar_prefetch=1,                   # step_size prefetched into SMEM
            grid=grid,
            in_specs=[pl.BlockSpec((block_rows, cols), lambda i, step: (i, 0))],
            out_specs=pl.BlockSpec((block_rows, cols), lambda i, step: (i, 0)),
        ),
        compiler_params=pltpu.CompilerParams(
            dimension_semantics=("parallel",),       # elementwise -> megacore-shardable
            vmem_limit_bytes=40 * 1024 * 1024,       # safe on v5e/v6e/v7x for 4 MiB tiles
        ),
        cost_estimate=pl.CostEstimate(
            flops=5 * n,                             # div, 2x cmp/select, round, mul
            transcendentals=0,
            bytes_accessed=2 * n * itemsize),        # read + write, memory-bound
    )(step, x2)
    return out2.reshape(-1)


def ltq_act_quantize_old(x, a_step_size, a_bits: int, *, small_fast_path_bytes: int = 1 << 20):
    """Forward pass of LTQActQuantizer_old as a Pallas TPU kernel."""
    whigh = float(2 ** (a_bits - 1))                 # e.g. a_bits=8 -> +128 (per the module)
    wlow = float(-(2 ** (a_bits - 1) - 1))           # e.g. a_bits=8 -> -127

    orig_shape = x.shape
    dtype = x.dtype
    itemsize = jnp.dtype(dtype).itemsize
    n = int(x.size)

    step_f32 = jnp.asarray(a_step_size, dtype=jnp.float32)

    # Small-tensor fast path: fixed custom-call / pipeline overhead dominates at KB scale.
    if n * itemsize < small_fast_path_bytes:
        return _lsq_math_f32(x, step_f32, wlow, whigh).astype(dtype)

    flat = x.reshape(-1)
    rem = n % 128
    n_main = n - rem

    main = flat[:n_main] if rem else flat
    main_out = _lsq_pallas_2d(main, step_f32, wlow, whigh, dtype, itemsize)

    if rem:
        # <128-element tail handled in the wrapper (no full-tensor pad/slice passes).
        tail_out = _lsq_math_f32(flat[n_main:], step_f32, wlow, whigh).astype(dtype)
        out_flat = jnp.concatenate([main_out, tail_out])
    else:
        out_flat = main_out
    return out_flat.reshape(orig_shape)


if __name__ == "__main__":
    key = jax.random.PRNGKey(0)
    a_bits = 8
    mean_scale = 0.9  # unused in forward (kept for parity with the module __init__)

    # nn.Parameter(torch.tensor(1.0)) -> fp32 scalar.
    a_step_size = jnp.float32(1.0)
    whigh = float(2 ** (a_bits - 1))
    wlow = float(-(2 ** (a_bits - 1) - 1))

    k1, k2, k3 = jax.random.split(key, 3)

    # 1) Small NCHW tensor (lane-aligned), forced through the Pallas path.
    x1 = jax.random.normal(k1, (2, 4, 16, 16), dtype=jnp.float32) * 4.0
    out1 = jax.block_until_ready(
        ltq_act_quantize_old(x1, a_step_size, a_bits, small_fast_path_bytes=0))
    ref1 = _lsq_math_f32(x1, jnp.float32(a_step_size), wlow, whigh)
    assert out1.shape == x1.shape and out1.dtype == x1.dtype
    assert jnp.allclose(out1, ref1, atol=1e-6, rtol=1e-6)

    # 2) Unaligned element count (exercises the <128-element tail path).
    x2 = jax.random.normal(k2, (2, 3, 5, 7), dtype=jnp.float32) * 4.0
    out2 = jax.block_until_ready(
        ltq_act_quantize_old(x2, jnp.float32(0.1), a_bits, small_fast_path_bytes=0))
    ref2 = _lsq_math_f32(x2, jnp.float32(0.1), wlow, whigh)
    assert out2.shape == x2.shape
    assert jnp.allclose(out2, ref2, atol=1e-6, rtol=1e-6)

    # 3) Slightly larger aligned tensor -> multi-step grid inside the kernel.
    x3 = jax.random.normal(k3, (8, 16, 32, 32), dtype=jnp.float32) * 4.0
    out3 = jax.block_until_ready(
        ltq_act_quantize_old(x3, jnp.float32(0.05), a_bits, small_fast_path_bytes=0))
    ref3 = _lsq_math_f32(x3, jnp.float32(0.05), wlow, whigh)
    assert jnp.allclose(out3, ref3, atol=1e-6, rtol=1e-6)

    # 4) Default small-tensor fast path (plain fused XLA elementwise).
    out4 = jax.block_until_ready(ltq_act_quantize_old(x1, a_step_size, a_bits))
    assert jnp.allclose(out4, ref1, atol=1e-6, rtol=1e-6)

    print("KERNEL_OK")
</pallas_src>

<mosaic_0001>
module attributes {stable_mosaic.version = 11 : i64} {
  func.func @lsq_kernel(%arg0: i32, %arg1: memref<1xf32, #tpu.memory_space<smem>>, %arg2: memref<1x2048xf32, #tpu.memory_space<vmem>>, %arg3: memref<1x2048xf32, #tpu.memory_space<vmem>>) attributes {dimension_semantics = [#tpu.dimension_semantics<parallel>], iteration_bounds = array<i64: 1>, scalar_prefetch = 1 : i64, scratch_operands = 0 : i64, tpu.core_type = #tpu.core_type<tc>, window_params = [{transform_indices = @transform_0, window_bounds = array<i64: 1, 2048>}, {transform_indices = @transform_1, window_bounds = array<i64: 1, 2048>}]} {
    %c0 = arith.constant 0 : index
    %0 = memref.load %arg1[%c0] : memref<1xf32, #tpu.memory_space<smem>>
    %c0_0 = arith.constant 0 : index
    %c0_1 = arith.constant 0 : index
    %1 = vector.load %arg2[%c0_0, %c0_1] : memref<1x2048xf32, #tpu.memory_space<vmem>>, vector<1x2048xf32>
    %2 = vector.broadcast %0 : f32 to vector<1x2048xf32>
    %3 = arith.divf %1, %2 : vector<1x2048xf32>
    %cst = arith.constant -1.270000e+02 : f32
    %cst_2 = arith.constant 1.280000e+02 : f32
    %4 = vector.broadcast %cst : f32 to vector<1x2048xf32>
    %5 = arith.maximumf %4, %3 : vector<1x2048xf32>
    %6 = vector.broadcast %cst_2 : f32 to vector<1x2048xf32>
    %7 = arith.minimumf %6, %5 : vector<1x2048xf32>
    %8 = math.roundeven %7 : vector<1x2048xf32>
    %9 = vector.broadcast %0 : f32 to vector<1x2048xf32>
    %10 = arith.mulf %8, %9 : vector<1x2048xf32>
    %c0_3 = arith.constant 0 : index
    %c0_4 = arith.constant 0 : index
    %11 = vector.load %arg3[%c0_3, %c0_4] : memref<1x2048xf32, #tpu.memory_space<vmem>>, vector<1x2048xf32>
    tpu.vector_store %arg3[%c0_3, %c0_4], %10 {strides = array<i32>} : memref<1x2048xf32, #tpu.memory_space<vmem>>, vector<1x2048xf32>,
    return
  }
  func.func @transform_0(%arg0: i32, %arg1: memref<1xf32, #tpu.memory_space<smem>>) -> (i32, i32) {
    %c0_i32 = arith.constant 0 : i32
    %c0_i32_0 = arith.constant 0 : i32
    return %arg0, %c0_i32 : i32, i32
  }
  func.func @transform_1(%arg0: i32, %arg1: memref<1xf32, #tpu.memory_space<smem>>) -> (i32, i32) {
    %c0_i32 = arith.constant 0 : i32
    %c0_i32_0 = arith.constant 0 : i32
    return %arg0, %c0_i32 : i32, i32
  }
}

</mosaic_0001>

<bundles_post_ra>
// kernel: tpu_custom_call.1
= control target key start
LH: loop header
LB: loop body
LE: loop exit
PB: predicated region body
PF: predicated region fallthrough
CT: control target
= control target key end

     0   :  { %8 = vsyncpa [#allocation5], 0  ;;  %s153_s0 = inlined_call_operand.<no memory space> [shape: f32[1], index: 0, kind: input, shape index: {}]   ;;  %s154_s1 = inlined_call_operand.hbm [shape: f32[1,2048], index: 1, kind: input, shape index: {}]   ;;  %s155_s2 = inlined_call_operand.hbm [shape: f32[1,2048], index: 2, kind: output, shape index: {}]  }
   0x1   :  { %9 = vsyncpa [#allocation6], 0  ;;  %s109_s9 = smov [#allocation4]   ;;  %s61_s13 = scalar_lea.hbm %s154_s1, 256 }
   0x2   :  { %s16_s10 = sshll.u32 %s109_s9, 4  ;;  %p62_p0 = scmp.ne.s32.totalorder %s154_s1, %s61_s13  ;;  %s17_s10 = int_to_ptr.vmem [resolvable:$true] %s16_s10 }
   0x3   :  { %p65_p1 = scmp.lt.u32.totalorder %s61_s13, %s154_s1 }
   0x5   :  { %p67_p2 = pnand %p65_p1, %p62_p0 }
   0x7   :  { %70 = shalt.err (!%p67_p2)
}
   0x8   :  { %s71_s18 = scalar_lea.vmem %s17_s10, 256  ;;  %p76_p4 = scmp.lt.s32.totalorder %s17_s10, %s17_s10 }
   0x9   :  { %p72_p3 = scmp.ne.s32.totalorder %s17_s10, %s71_s18  ;;  %p77_p5 = scmp.lt.s32.totalorder %s71_s18, %s71_s18 }
   0xb   :  { %p78_p6 = por %p77_p5, %p76_p4 }
   0xd   :  { %p79_p7 = pnand %p78_p6, %p72_p3 }
   0xf   :  { %82 = shalt.err (!%p79_p7)
}
  0x10   :  { %19 = dma.hbm_to_vmem [thread:$0]  %s154_s1, 256, %s17_s10, [#allocation5]  }
  0x11   :  { %105 = dma.done.wait [#allocation5], 256  }
  0x12   :  { %106 = vsyncadd [#allocation5], 4294967040  ;;  %v26_v0 = vstv %s153_s0  ;;  %v24_v1 = vld [vmem:[#allocation4] sm:$0xff]  ;;  %v25_v2 = vld [vmem:[#allocation4 + $0x8] sm:$0xff]  ;;  %s110_s23 = smov [#allocation7]  }
  0x13   :  { %59 = vrcp.f32 %v26_v0  ;;  %s46_s24 = sshll.u32 %s110_s23, 4  ;;  %s47_s24 = int_to_ptr.vmem [resolvable:$true] %s46_s24 }
  0x14   :  { %s83_s0 = scalar_lea.vmem %s47_s24, 256  ;;  %p88_p9 = scmp.lt.s32.totalorder %s47_s24, %s47_s24 }
  0x15   :  { %p84_p8 = scmp.ne.s32.totalorder %s47_s24, %s83_s0  ;;  %p89_p10 = scmp.lt.s32.totalorder %s83_s0, %s83_s0 }
  0x17   :  { %p90_p11 = por %p89_p10, %p88_p9 }
  0x19   :  { %p91_p12 = pnand %p90_p11, %p84_p8 }
  0x1d   :  { %v60_v3 = vpop.eup %59 }
  0x1e   :  { %v28_v4 = vmul.f32 %v60_v3, %v24_v1  ;;  %v29_v5 = vmul.f32 %v60_v3, %v25_v2 }
  0x20   :  { %v30_v6 = vmax.f32 %v28_v4, -127.0  ;;  %v31_v7 = vmax.f32 %v29_v5, -127.0 }
  0x22   :  { %v32_v8 = vmin.f32 %v30_v6, 128.0  ;;  %v33_v9 = vmin.f32 %v31_v7, 128.0 }
  0x24   :  { %v55_v10 = vround.rtne.f32 %v32_v8  ;;  %v56_v11 = vround.rtne.f32 %v33_v9 }
  0x26   :  { %v36_v12 = vmul.f32 %v55_v10, %v26_v0  ;;  %v37_v13 = vmul.f32 %v56_v11, %v26_v0 }
  0x28   :  { %38 = vst [vmem:[#allocation7] sm:$0xff] %v36_v12  ;;  %39 = vst [vmem:[#allocation7 + $0x8] sm:$0xff] %v37_v13 }
  0x29   :  { %94 = shalt.err (!%p91_p12)
}
  0x2a   :  { %s95_s26 = scalar_lea.hbm %s155_s2, 256 }
  0x2b   :  { %p96_p13 = scmp.ne.s32.totalorder %s155_s2, %s95_s26  ;;  %p99_p0 = scmp.lt.u32.totalorder %s95_s26, %s155_s2 }
  0x2d   :  { %p101_p1 = pnand %p99_p0, %p96_p13 }
  0x2f   :  { %104 = shalt.err (!%p101_p1)
}
  0x30   :  { %49 = dma.vmem_to_hbm [thread:$0]  %s47_s24, 256, %s155_s2, [#allocation6]  }
  0x31   :  { %107 = dma.done.wait [#allocation6], 256  }
  0x32   :  { %108 = vsyncadd [#allocation6], 4294967040 }
  0x33   :  { %53 = vsyncpa [#allocation5], 1 }
  0x34   :  { %54 = vsyncpa [#allocation6], 1 }

</bundles_post_ra>
